<compile_context>
chip_gen: v6e
topology: v6e:2x2x1
jax: 0.10.0
libtpu: 0.0.40
codegen_flags: <defaults>
</compile_context>

<pallas_src>
import functools

import jax
import jax.numpy as jnp
from jax.experimental import pallas as pl
from jax.experimental.pallas import tpu as pltpu

LANE = 128
SUBLANE = 8
MAX_BATCH_TILE = 1024           # overhead-driven cap; far below any VMEM limit
VPU_FIRST_LAYER_MAX_IN = 8      # tiny-K layer-1 goes to the VPU, not the MXU
COMPUTE_DTYPE = jnp.bfloat16    # MXU-native on v5e / v6e / v7x


def _round_up(x, m):
    return ((x + m - 1) // m) * m


def _pad2d(x, rows, cols):
    r, c = x.shape
    return jnp.pad(x, ((0, rows - r), (0, cols - c)))


def _mlp_kernel(x_ref,
                w1_ref, b1_ref,
                w2_ref, b2_ref,
                w3_ref, b3_ref,
                w4_ref, b4_ref,
                o_ref, *, in_size, vpu_first_layer):
    """Fused (Linear -> ReLU) x 4 on one batch tile.

    Weights/biases use constant index_maps (VMEM-resident across grid steps).
    Layer 1: VPU broadcast-MAC when in_size is tiny (K would be ~all zeros on
    the MXU). Layers 2-4: bf16 MXU matmuls, f32 accumulation, f32 bias+ReLU.
    """
    if vpu_first_layer:
        # x: (tb, in_size) f32 (unpadded). w1: (in_size, out_p) f32.
        x = x_ref[...].astype(jnp.float32)
        acc = b1_ref[...] + x[:, 0:1] * w1_ref[0:1, :]
        for k in range(1, in_size):                      # static tiny unroll
            acc = acc + x[:, k:k + 1] * w1_ref[k:k + 1, :]
        h = jnp.maximum(acc, 0.0).astype(COMPUTE_DTYPE)
    else:
        # Fallback for wide inputs: bf16 cast happens inside the kernel.
        h = x_ref[...].astype(COMPUTE_DTYPE)
        acc = jnp.dot(h, w1_ref[...], preferred_element_type=jnp.float32)
        h = jnp.maximum(acc + b1_ref[...], 0.0).astype(COMPUTE_DTYPE)

    for w_ref, b_ref in ((w2_ref, b2_ref), (w3_ref, b3_ref)):
        acc = jnp.dot(h, w_ref[...], preferred_element_type=jnp.float32)
        h = jnp.maximum(acc + b_ref[...], 0.0).astype(COMPUTE_DTYPE)

    acc = jnp.dot(h, w4_ref[...], preferred_element_type=jnp.float32)
    # Final ReLU matches the PyTorch Sequential, which ends with nn.ReLU().
    o_ref[...] = jnp.maximum(acc + b4_ref[...], 0.0).astype(o_ref.dtype)


def prepare_params(params, compute_dtype=COMPUTE_DTYPE):
    """One-time parameter prep, hoisted out of the per-call hot path.

    torch nn.Linear stores W as (out, in); pre-transpose to (in, out) and
    zero-pad the output dim to a lane multiple. Layer 1 with tiny in_size is
    kept unpadded/f32 for the VPU MAC path; all other weights are lane-padded
    and cast to bf16 for the MXU. Biases stay f32 (VPU add). Zero padding
    stays exactly zero through bias(0)+ReLU, so padded lanes never contaminate
    real outputs.
    """
    prepared = []
    for idx, (w, b) in enumerate(params):
        w = jnp.asarray(w, jnp.float32)
        b = jnp.asarray(b, jnp.float32)
        out_f, in_f = w.shape
        out_p = _round_up(out_f, LANE)
        if idx == 0 and in_f <= VPU_FIRST_LAYER_MAX_IN:
            wt = _pad2d(w.T, in_f, out_p)                       # f32, K unpadded
        else:
            in_p = _round_up(in_f, LANE)
            wt = _pad2d(w.T, in_p, out_p).astype(compute_dtype)  # bf16, lane-padded
        bp = _pad2d(b.reshape(1, -1), 1, out_p)                  # f32
        prepared.append((wt, bp))
    return tuple(prepared)


@functools.partial(jax.jit, static_argnames=("out_size",))
def perceptron_forward(x, prepared, out_size):
    """x: (B, in_size) f32. prepared: output of prepare_params."""
    B, in_size = x.shape
    w1 = prepared[0][0]
    out_p = prepared[-1][0].shape[1]
    vpu_first = (w1.shape[0] == in_size) and (in_size <= VPU_FIRST_LAYER_MAX_IN)

    # Single grid step for small batches; 1024-row tiles for big ones (>= 2
    # steps so the "parallel" axis shards across v7x's two TensorCores).
    tb = B if B <= MAX_BATCH_TILE else MAX_BATCH_TILE
    pb = _round_up(B, tb)

    if vpu_first:
        # No lane padding, no cast: x goes in as-is (row-pad only if tiled).
        x_cols = in_size
        x_in = x if pb == B else _pad2d(x, pb, in_size)
    else:
        # Wide-input fallback: lane-pad rows/cols in f32; bf16 cast is in-kernel.
        x_cols = w1.shape[0]
        x_in = _pad2d(x, pb, x_cols)

    flat_params = []
    in_specs = [pl.BlockSpec((tb, x_cols), lambda i: (i, 0))]
    for wt, bp in prepared:
        flat_params.extend([wt, bp])
        in_specs.append(pl.BlockSpec(wt.shape, lambda i: (0, 0)))  # VMEM-resident
        in_specs.append(pl.BlockSpec(bp.shape, lambda i: (0, 0)))  # VMEM-resident

    kernel = functools.partial(_mlp_kernel, in_size=in_size,
                               vpu_first_layer=vpu_first)

    out_padded = pl.pallas_call(
        kernel,
        out_shape=jax.ShapeDtypeStruct((pb, out_p), COMPUTE_DTYPE),
        grid=(pb // tb,),
        in_specs=in_specs,
        out_specs=pl.BlockSpec((tb, out_p), lambda i: (i, 0)),
        compiler_params=pltpu.CompilerParams(
            dimension_semantics=("parallel",),
        ),
    )(x_in, *flat_params)

    return out_padded[:B, :out_size].astype(jnp.float32)


def init_linear(key, in_f, out_f):
    """Deterministic init mirroring torch.nn.Linear default (uniform +-1/sqrt(fan_in))."""
    kw, kb = jax.random.split(key)
    bound = 1.0 / jnp.sqrt(jnp.float32(in_f))
    w = jax.random.uniform(kw, (out_f, in_f), jnp.float32, -bound, bound)
    b = jax.random.uniform(kb, (out_f,), jnp.float32, -bound, bound)
    return w, b


def reference_forward(x, params):
    h = x
    for (w, b) in params:
        h = jnp.maximum(h @ w.T + b, 0.0)
    return h


if __name__ == "__main__":
    # Shapes taken from the original script: X = df.iloc[0:100, 0:2], hidden=50,
    # one-hot 2-class output.
    in_size, hidden_size, out_size = 2, 50, 2
    batch = 100

    key = jax.random.PRNGKey(0)
    k_x, k1, k2, k3, k4 = jax.random.split(key, 5)

    params = [
        init_linear(k1, in_size, hidden_size),
        init_linear(k2, hidden_size, hidden_size),
        init_linear(k3, hidden_size, hidden_size),
        init_linear(k4, hidden_size, out_size),
    ]

    prepared = prepare_params(params)  # one-time prep, outside the hot path

    x = jax.random.normal(k_x, (batch, in_size), jnp.float32)

    out = perceptron_forward(x, prepared, out_size)
    out = jax.block_until_ready(out)

    ref = reference_forward(x, params)
    assert out.shape == (batch, out_size), out.shape
    # bf16 matmuls (f32 accumulation) + bf16 output vs. f32 reference.
    max_err = jnp.max(jnp.abs(out - ref))
    assert jnp.allclose(out, ref, atol=5e-2, rtol=5e-2), max_err

    print("KERNEL_OK")
</pallas_src>

<mosaic_0001>
module attributes {stable_mosaic.version = 11 : i64} {
  func.func @_mlp_kernel(%arg0: i32, %arg1: memref<100x2xf32, #tpu.memory_space<vmem>>, %arg2: memref<2x128xf32, #tpu.memory_space<vmem>>, %arg3: memref<1x128xf32, #tpu.memory_space<vmem>>, %arg4: memref<128x128xbf16, #tpu.memory_space<vmem>>, %arg5: memref<1x128xf32, #tpu.memory_space<vmem>>, %arg6: memref<128x128xbf16, #tpu.memory_space<vmem>>, %arg7: memref<1x128xf32, #tpu.memory_space<vmem>>, %arg8: memref<128x128xbf16, #tpu.memory_space<vmem>>, %arg9: memref<1x128xf32, #tpu.memory_space<vmem>>, %arg10: memref<100x128xbf16, #tpu.memory_space<vmem>>) attributes {dimension_semantics = [#tpu.dimension_semantics<parallel>], iteration_bounds = array<i64: 1>, scalar_prefetch = 0 : i64, scratch_operands = 0 : i64, tpu.core_type = #tpu.core_type<tc>, window_params = [{transform_indices = @transform_0, window_bounds = array<i64: 100, 2>}, {pipeline_mode = #tpu.pipeline_mode<synchronous>, transform_indices = @transform_1, window_bounds = array<i64: 2, 128>}, {pipeline_mode = #tpu.pipeline_mode<synchronous>, transform_indices = @transform_2, window_bounds = array<i64: 1, 128>}, {pipeline_mode = #tpu.pipeline_mode<synchronous>, transform_indices = @transform_3, window_bounds = array<i64: 128, 128>}, {pipeline_mode = #tpu.pipeline_mode<synchronous>, transform_indices = @transform_4, window_bounds = array<i64: 1, 128>}, {pipeline_mode = #tpu.pipeline_mode<synchronous>, transform_indices = @transform_5, window_bounds = array<i64: 128, 128>}, {pipeline_mode = #tpu.pipeline_mode<synchronous>, transform_indices = @transform_6, window_bounds = array<i64: 1, 128>}, {pipeline_mode = #tpu.pipeline_mode<synchronous>, transform_indices = @transform_7, window_bounds = array<i64: 128, 128>}, {pipeline_mode = #tpu.pipeline_mode<synchronous>, transform_indices = @transform_8, window_bounds = array<i64: 1, 128>}, {transform_indices = @transform_9, window_bounds = array<i64: 100, 128>}]} {
    %c0 = arith.constant 0 : index
    %c0_0 = arith.constant 0 : index
    %0 = vector.load %arg1[%c0, %c0_0] : memref<100x2xf32, #tpu.memory_space<vmem>>, vector<100x2xf32>
    %c0_1 = arith.constant 0 : index
    %c0_2 = arith.constant 0 : index
    %1 = vector.load %arg3[%c0_1, %c0_2] : memref<1x128xf32, #tpu.memory_space<vmem>>, vector<1x128xf32>
    %2 = vector.extract_strided_slice %0 {offsets = [0, 0], sizes = [100, 1], strides = [1, 1]} : vector<100x2xf32> to vector<100x1xf32>
    %c0_3 = arith.constant 0 : index
    %c0_4 = arith.constant 0 : index
    %3 = vector.load %arg2[%c0_3, %c0_4] : memref<2x128xf32, #tpu.memory_space<vmem>>, vector<1x128xf32>
    %4 = vector.broadcast %2 : vector<100x1xf32> to vector<100x128xf32>
    %5 = vector.broadcast %3 : vector<1x128xf32> to vector<100x128xf32>
    %6 = arith.mulf %4, %5 : vector<100x128xf32>
    %7 = vector.broadcast %1 : vector<1x128xf32> to vector<100x128xf32>
    %8 = arith.addf %7, %6 : vector<100x128xf32>
    %9 = vector.extract_strided_slice %0 {offsets = [0, 1], sizes = [100, 1], strides = [1, 1]} : vector<100x2xf32> to vector<100x1xf32>
    %c1 = arith.constant 1 : index
    %c0_5 = arith.constant 0 : index
    %10 = vector.load %arg2[%c1, %c0_5] : memref<2x128xf32, #tpu.memory_space<vmem>>, vector<1x128xf32>
    %11 = vector.broadcast %9 : vector<100x1xf32> to vector<100x128xf32>
    %12 = vector.broadcast %10 : vector<1x128xf32> to vector<100x128xf32>
    %13 = arith.mulf %11, %12 : vector<100x128xf32>
    %14 = arith.addf %8, %13 : vector<100x128xf32>
    %cst = arith.constant 0.000000e+00 : f32
    %15 = vector.broadcast %cst : f32 to vector<100x128xf32>
    %16 = arith.maximumf %14, %15 : vector<100x128xf32>
    %17 = arith.truncf %16 : vector<100x128xf32> to vector<100x128xbf16>
    %c0_6 = arith.constant 0 : index
    %c0_7 = arith.constant 0 : index
    %18 = vector.load %arg4[%c0_6, %c0_7] : memref<128x128xbf16, #tpu.memory_space<vmem>>, vector<128x128xbf16>
    %cst_8 = arith.constant dense<0.000000e+00> : vector<100x128xf32>
    %19 = tpu.matmul %17, %18, %cst_8 {dimension_numbers = #tpu.dot_dimension_numbers<[1], [0], [0], [1], [0, 0, 1, 1], [], []>} : vector<100x128xbf16>, vector<128x128xbf16>, vector<100x128xf32> -> vector<100x128xf32>
    %c0_9 = arith.constant 0 : index
    %c0_10 = arith.constant 0 : index
    %20 = vector.load %arg5[%c0_9, %c0_10] : memref<1x128xf32, #tpu.memory_space<vmem>>, vector<1x128xf32>
    %21 = vector.broadcast %20 : vector<1x128xf32> to vector<100x128xf32>
    %22 = arith.addf %19, %21 : vector<100x128xf32>
    %cst_11 = arith.constant 0.000000e+00 : f32
    %23 = vector.broadcast %cst_11 : f32 to vector<100x128xf32>
    %24 = arith.maximumf %22, %23 : vector<100x128xf32>
    %25 = arith.truncf %24 : vector<100x128xf32> to vector<100x128xbf16>
    %c0_12 = arith.constant 0 : index
    %c0_13 = arith.constant 0 : index
    %26 = vector.load %arg6[%c0_12, %c0_13] : memref<128x128xbf16, #tpu.memory_space<vmem>>, vector<128x128xbf16>
    %cst_14 = arith.constant dense<0.000000e+00> : vector<100x128xf32>
    %27 = tpu.matmul %25, %26, %cst_14 {dimension_numbers = #tpu.dot_dimension_numbers<[1], [0], [0], [1], [0, 0, 1, 1], [], []>} : vector<100x128xbf16>, vector<128x128xbf16>, vector<100x128xf32> -> vector<100x128xf32>
    %c0_15 = arith.constant 0 : index
    %c0_16 = arith.constant 0 : index
    %28 = vector.load %arg7[%c0_15, %c0_16] : memref<1x128xf32, #tpu.memory_space<vmem>>, vector<1x128xf32>
    %29 = vector.broadcast %28 : vector<1x128xf32> to vector<100x128xf32>
    %30 = arith.addf %27, %29 : vector<100x128xf32>
    %cst_17 = arith.constant 0.000000e+00 : f32
    %31 = vector.broadcast %cst_17 : f32 to vector<100x128xf32>
    %32 = arith.maximumf %30, %31 : vector<100x128xf32>
    %33 = arith.truncf %32 : vector<100x128xf32> to vector<100x128xbf16>
    %c0_18 = arith.constant 0 : index
    %c0_19 = arith.constant 0 : index
    %34 = vector.load %arg8[%c0_18, %c0_19] : memref<128x128xbf16, #tpu.memory_space<vmem>>, vector<128x128xbf16>
    %cst_20 = arith.constant dense<0.000000e+00> : vector<100x128xf32>
    %35 = tpu.matmul %33, %34, %cst_20 {dimension_numbers = #tpu.dot_dimension_numbers<[1], [0], [0], [1], [0, 0, 1, 1], [], []>} : vector<100x128xbf16>, vector<128x128xbf16>, vector<100x128xf32> -> vector<100x128xf32>
    %c0_21 = arith.constant 0 : index
    %c0_22 = arith.constant 0 : index
    %36 = vector.load %arg9[%c0_21, %c0_22] : memref<1x128xf32, #tpu.memory_space<vmem>>, vector<1x128xf32>
    %37 = vector.broadcast %36 : vector<1x128xf32> to vector<100x128xf32>
    %38 = arith.addf %35, %37 : vector<100x128xf32>
    %cst_23 = arith.constant 0.000000e+00 : f32
    %39 = vector.broadcast %cst_23 : f32 to vector<100x128xf32>
    %40 = arith.maximumf %38, %39 : vector<100x128xf32>
    %41 = arith.truncf %40 : vector<100x128xf32> to vector<100x128xbf16>
    %c0_24 = arith.constant 0 : index
    %c0_25 = arith.constant 0 : index
    %42 = vector.load %arg10[%c0_24, %c0_25] : memref<100x128xbf16, #tpu.memory_space<vmem>>, vector<100x128xbf16>
    tpu.vector_store %arg10[%c0_24, %c0_25], %41 {strides = array<i32>} : memref<100x128xbf16, #tpu.memory_space<vmem>>, vector<100x128xbf16>,
    return
  }
  func.func @transform_0(%arg0: i32) -> (i32, i32) {
    %c0_i32 = arith.constant 0 : i32
    %c0_i32_0 = arith.constant 0 : i32
    return %arg0, %c0_i32 : i32, i32
  }
  func.func @transform_1(%arg0: i32) -> (i32, i32) {
    %c0_i32 = arith.constant 0 : i32
    %c0_i32_0 = arith.constant 0 : i32
    %c0_i32_1 = arith.constant 0 : i32
    return %c0_i32, %c0_i32_0 : i32, i32
  }
  func.func @transform_2(%arg0: i32) -> (i32, i32) {
    %c0_i32 = arith.constant 0 : i32
    %c0_i32_0 = arith.constant 0 : i32
    %c0_i32_1 = arith.constant 0 : i32
    return %c0_i32, %c0_i32_0 : i32, i32
  }
  func.func @transform_3(%arg0: i32) -> (i32, i32) {
    %c0_i32 = arith.constant 0 : i32
    %c0_i32_0 = arith.constant 0 : i32
    %c0_i32_1 = arith.constant 0 : i32
    return %c0_i32, %c0_i32_0 : i32, i32
  }
  func.func @transform_4(%arg0: i32) -> (i32, i32) {
    %c0_i32 = arith.constant 0 : i32
    %c0_i32_0 = arith.constant 0 : i32
    %c0_i32_1 = arith.constant 0 : i32
    return %c0_i32, %c0_i32_0 : i32, i32
  }
  func.func @transform_5(%arg0: i32) -> (i32, i32) {
    %c0_i32 = arith.constant 0 : i32
    %c0_i32_0 = arith.constant 0 : i32
    %c0_i32_1 = arith.constant 0 : i32
    return %c0_i32, %c0_i32_0 : i32, i32
  }
  func.func @transform_6(%arg0: i32) -> (i32, i32) {
    %c0_i32 = arith.constant 0 : i32
    %c0_i32_0 = arith.constant 0 : i32
    %c0_i32_1 = arith.constant 0 : i32
    return %c0_i32, %c0_i32_0 : i32, i32
  }
  func.func @transform_7(%arg0: i32) -> (i32, i32) {
    %c0_i32 = arith.constant 0 : i32
    %c0_i32_0 = arith.constant 0 : i32
    %c0_i32_1 = arith.constant 0 : i32
    return %c0_i32, %c0_i32_0 : i32, i32
  }
  func.func @transform_8(%arg0: i32) -> (i32, i32) {
    %c0_i32 = arith.constant 0 : i32
    %c0_i32_0 = arith.constant 0 : i32
    %c0_i32_1 = arith.constant 0 : i32
    return %c0_i32, %c0_i32_0 : i32, i32
  }
  func.func @transform_9(%arg0: i32) -> (i32, i32) {
    %c0_i32 = arith.constant 0 : i32
    %c0_i32_0 = arith.constant 0 : i32
    return %arg0, %c0_i32 : i32, i32
  }
}

</mosaic_0001>

<bundles_post_ra>
// kernel: perceptron_forward.1
= control target key start
LH: loop header
LB: loop body
LE: loop exit
PB: predicated region body
PF: predicated region fallthrough
CT: control target
= control target key end

     0   :  { %14 = vsyncpa [#allocation3], 0  ;;  %s1593_s0 = inlined_call_operand.vmem [shape: f32[100,2], index: 0, kind: input, shape index: {}]   ;;  %s1594_s1 = inlined_call_operand.vmem [shape: f32[2,128], index: 1, kind: input, shape index: {}]   ;;  %s1595_s2 = inlined_call_operand.vmem [shape: f32[1,128], index: 2, kind: input, shape index: {}]   ;;  %s1596_s3 = inlined_call_operand.vmem [shape: bf16[128,128], index: 3, kind: input, shape index: {}]   ;;  %s1597_s4 = inlined_call_operand.vmem [shape: f32[1,128], index: 4, kind: input, shape index: {}]   ;;  %s1598_s5 = inlined_call_operand.hbm [shape: bf16[128,128], index: 5, kind: input, shape index: {}]   ;;  %s1599_s6 = inlined_call_operand.vmem [shape: f32[1,128], index: 6, kind: input, shape index: {}]   ;;  %s1600_s7 = inlined_call_operand.hbm [shape: bf16[128,128], index: 7, kind: input, shape index: {}]   ;;  %s1601_s8 = inlined_call_operand.vmem [shape: f32[1,128], index: 8, kind: input, shape index: {}]   ;;  %s1602_s9 = inlined_call_operand.vmem [shape: bf16[100,128], index: 9, kind: output, shape index: {}]  }
   0x1   :  { %15 = vsyncpa [#allocation5], 0  ;;  %s1260_s30 = smov [#allocation2]  }
   0x2   :  { %s31_s10 = sshll.u32 %s1260_s30, 4  ;;  %s32_s10 = int_to_ptr.vmem [resolvable:$true] %s31_s10 }
   0x3   :  { %s1224_s11 = scalar_lea.vmem %s32_s10, 1024  ;;  %p1229_p1 = scmp.lt.s32.totalorder %s32_s10, %s32_s10 }
   0x4   :  { %p1225_p0 = scmp.ne.s32.totalorder %s32_s10, %s1224_s11  ;;  %p1230_p2 = scmp.lt.s32.totalorder %s1224_s11, %s1224_s11 }
   0x6   :  { %p1231_p3 = por %p1230_p2, %p1229_p1 }
   0x8   :  { %p1232_p4 = pnand %p1231_p3, %p1225_p0 }
   0xa   :  { %1235 = shalt.err (!%p1232_p4)
}
   0xb   :  { %s1261_s12 = smov 64   ;;  %s1262_s13 = smov 4  }
   0xc   :  { %37 = dma.hbm_to_vmem [thread:$0]  %s1598_s5, 1024, %s32_s10, [#allocation3], %s1261_s12, %s1261_s12, %s1262_s13  }
   0xd   :  { %s1263_s16 = smov [#allocation4]  }
   0xe   :  { %s45_s17 = sshll.u32 %s1263_s16, 4  ;;  %s46_s17 = int_to_ptr.vmem [resolvable:$true] %s45_s17 }
   0xf   :  { %s1244_s18 = scalar_lea.vmem %s46_s17, 1024  ;;  %p1249_p6 = scmp.lt.s32.totalorder %s46_s17, %s46_s17 }
  0x10   :  { %p1245_p5 = scmp.ne.s32.totalorder %s46_s17, %s1244_s18  ;;  %p1250_p7 = scmp.lt.s32.totalorder %s1244_s18, %s1244_s18 }
  0x12   :  { %p1251_p8 = por %p1250_p7, %p1249_p6 }
  0x14   :  { %p1252_p9 = pnand %p1251_p8, %p1245_p5 }
  0x16   :  { %1255 = shalt.err (!%p1252_p9)
}
  0x17   :  { %51 = dma.hbm_to_vmem [thread:$0]  %s1600_s7, 1024, %s46_s17, [#allocation5], %s1261_s12, %s1261_s12, %s1262_s13  }
  0x18   :  { %1256 = dma.done.wait [#allocation3], 1024  }
  0x19   :  { %1257 = vsyncadd [#allocation3], 4294966272 }
  0x1a   :  { %1258 = dma.done.wait [#allocation5], 1024  }
  0x1b   :  { %1259 = vsyncadd [#allocation5], 4294966272  ;;  %v1264_v0 = vmov 1   ;;  %v1265_v1 = vmov 0   ;;  %v1266_v2 = vmov 0.0   ;;  %v61_v3 = vld [vmem:[%s1593_s0] sm:$0xff] }
  0x1c   :  { %1175 = vset.pattern.permute.xlu1 %v1264_v0  ;;  %1174 = vset.pattern.permute.xlu0 %v1265_v1  ;;  %v62_v4 = vld [vmem:[%s1593_s0 + $0x8] sm:$0xff]  ;;  %v64_v5 = vld [vmem:[%s1593_s0 + $0x18] sm:$0xff]  ;;  %v63_v7 = vld [vmem:[%s1593_s0 + $0x10] sm:$0xff]  ;;  %vm1267_vm0 = vmmov 0  }
  0x1d   :  { %1018 = vmatprep.subr.bf16.mxu0 %v1266_v2  ;;  %1150 = vmatprep.subr.bf16.mxu1 %v1266_v2  ;;  %v1192_v6 = vld [vmem:[%s1596_s3 + $0x38] sm:$0xff]   ;;  %v1193_v8 = vld [vmem:[%s1596_s3 + $0x30] sm:$0xff]   ;;  %v1194_v9 = vld [vmem:[%s1596_s3 + $0x28] sm:$0xff]  }
  0x1e   :  { %179 = vperm.xlu1 %1175, %v61_v3   ;;  %78 = vperm.xlu0 %1174, %v61_v3   ;;  %v66_v10 = vld [vmem:[%s1593_s0 + $0x28] sm:$0xff]  ;;  %v1195_v11 = vld [vmem:[%s1596_s3 + $0x20] sm:$0xff]   ;;  %v67_v13 = vld [vmem:[%s1593_s0 + $0x30] sm:$0xff] }
  0x1f   :  { %1019 = vmatpush3.bf16.msra.mxu0 %v1192_v6  ;;  %1158 = vmatpush3.bf16.msra.mxu1 %v1192_v6  ;;  %v65_v12 = vld [vmem:[%s1593_s0 + $0x20] sm:$0xff]  ;;  %v1196_v14 = vld [vmem:[%s1596_s3 + $0x18] sm:$0xff]   ;;  %v1197_v15 = vld [vmem:[%s1596_s3 + $0x10] sm:$0xff]  }
  0x20   :  { %1020 = vmatprep.subr.bf16.mxu0 %v1266_v2  ;;  %1151 = vmatprep.subr.bf16.mxu1 %v1266_v2  ;;  %v1198_v16 = vld [vmem:[%s1596_s3 + $0x8] sm:$0xff]   ;;  %v68_v18 = vld [vmem:[%s1593_s0 + $0x38] sm:$0xff]  ;;  %v1199_v19 = vld [vmem:[%s1596_s3] sm:$0xff]  }
  0x21   :  { %1034 = vmatprep.mubr.msk.bf16.mxu0 %vm1267_vm0, %v1266_v2  ;;  %1050 = vmatprep.mubr.msk.bf16.mxu1 %vm1267_vm0, %v1266_v2  ;;  %v70_v17 = vld [vmem:[%s1593_s0 + $0x48] sm:$0xff]  ;;  %v71_v20 = vld [vmem:[%s1593_s0 + $0x50] sm:$0xff]  ;;  %v69_v21 = vld [vmem:[%s1593_s0 + $0x40] sm:$0xff] }
  0x22   :  { %183 = vperm.xlu1 %1175, %v62_v4   ;;  %83 = vperm.xlu0 %1174, %v62_v4   ;;  %v73_v22 = vld [vmem:[%s1593_s0 + $0x60] sm:$0xf]  ;;  %v72_v23 = vld [vmem:[%s1593_s0 + $0x58] sm:$0xff] }
  0x23   :  { %1021 = vmatpush3.bf16.msra.mxu0 %v1193_v8  ;;  %1159 = vmatpush3.bf16.msra.mxu1 %v1193_v8  ;;  %v1430_v24 = vld [vmem:[%s1594_s1] ss:$0 sm:$0xff]  ;;  %v1441_v29 = vld [vmem:[%s1594_s1 + $0x1] ss:$0 sm:$0xff] }
  0x24   :  { %1022 = vmatprep.subr.bf16.mxu0 %v1266_v2  ;;  %1152 = vmatprep.subr.bf16.mxu1 %v1266_v2  ;;  %v1435_v26 = vld [vmem:[%s1595_s2] ss:$0 sm:$0xff] }
  0x26   :  { %1176 = vset.pattern.permute.xlu1 %v1265_v1  ;;  %1177 = vset.pattern.permute.xlu0 %v1264_v0 }
  0x27   :  { %93 = vperm.xlu1 %1176, %v64_v5   ;;  %187 = vperm.xlu0 %1177, %v63_v7  }
  0x28   :  { %1023 = vmatpush3.bf16.msra.mxu0 %v1194_v9  ;;  %1160 = vmatpush3.bf16.msra.mxu1 %v1194_v9 }
  0x29   :  { %1024 = vmatprep.subr.bf16.mxu0 %v1266_v2  ;;  %1153 = vmatprep.subr.bf16.mxu1 %v1266_v2 }
  0x2b   :  { %1179 = vset.pattern.permute.xlu1 %v1264_v0  ;;  %1178 = vset.pattern.permute.xlu0 %v1265_v1 }
  0x2c   :  { %191 = vperm.xlu1 %1179, %v64_v5   ;;  %88 = vperm.xlu0 %1178, %v63_v7  }
  0x2d   :  { %1025 = vmatpush3.bf16.msra.mxu0 %v1195_v11  ;;  %1161 = vmatpush3.bf16.msra.mxu1 %v1195_v11 }
  0x2e   :  { %1026 = vmatprep.subr.bf16.mxu0 %v1266_v2  ;;  %1154 = vmatprep.subr.bf16.mxu1 %v1266_v2 }
  0x30   :  { %1180 = vset.pattern.permute.xlu1 %v1265_v1  ;;  %103 = vperm.xlu0 %1178, %v66_v10  }
  0x31   :  { %98 = vperm.xlu1 %1180, %v65_v12   ;;  %1027 = vmatpush3.bf16.msra.mxu0 %v1196_v14 }
  0x32   :  { %1028 = vmatprep.subr.bf16.mxu0 %v1266_v2  ;;  %1162 = vmatpush3.bf16.msra.mxu1 %v1196_v14 }
  0x33   :  { %1155 = vmatprep.subr.bf16.mxu1 %v1266_v2 }
  0x34   :  { %108 = vperm.xlu0 %1178, %v67_v13  }
  0x35   :  { %1181 = vset.pattern.permute.xlu1 %v1264_v0  ;;  %1029 = vmatpush3.bf16.msra.mxu0 %v1197_v15 }
  0x36   :  { %195 = vperm.xlu1 %1181, %v65_v12   ;;  %1030 = vmatprep.subr.bf16.mxu0 %v1266_v2 }
  0x37   :  { %1163 = vmatpush3.bf16.msra.mxu1 %v1197_v15 }
  0x38   :  { %1183 = vset.pattern.permute.xlu0 %v1264_v0  ;;  %1156 = vmatprep.subr.bf16.mxu1 %v1266_v2 }
  0x39   :  { %203 = vperm.xlu0 %1183, %v67_v13   ;;  %1031 = vmatpush3.bf16.msra.mxu0 %v1198_v16 }
  0x3a   :  { %199 = vperm.xlu1 %1181, %v66_v10   ;;  %1032 = vmatprep.subr.bf16.mxu0 %v1266_v2 }
  0x3b   :  { %1164 = vmatpush3.bf16.msra.mxu1 %v1198_v16 }
  0x3c   :  { %1157 = vmatprep.subr.bf16.mxu1 %v1266_v2 }
  0x3d   :  { %1186 = vset.pattern.permute.xlu0 %v1265_v1  ;;  %1033 = vmatpush3.bf16.msra.mxu0 %v1199_v19 }
  0x3e   :  { %1182 = vset.pattern.permute.xlu1 %v1265_v1  ;;  %123 = vperm.xlu0 %1186, %v70_v17  }
  0x3f   :  { %113 = vperm.xlu1 %1182, %v68_v18   ;;  %1106 = vmatprep.subr.bf16.mxu0 %v1266_v2 }
  0x40   :  { %1165 = vmatpush3.bf16.msra.mxu1 %v1199_v19 }
  0x41   :  { %1062 = vmatprep.subr.bf16.mxu1 %v1266_v2 }
  0x42   :  { %128 = vperm.xlu0 %1186, %v71_v20  }
  0x43   :  { %1184 = vset.pattern.permute.xlu1 %v1264_v0 }
  0x44   :  { %207 = vperm.xlu1 %1184, %v68_v18  }
  0x46   :  { %1189 = vset.pattern.permute.xlu0 %v1264_v0 }
  0x47   :  { %219 = vperm.xlu0 %1189, %v71_v20  }
  0x48   :  { %1185 = vset.pattern.permute.xlu1 %v1265_v1 }
  0x49   :  { %118 = vperm.xlu1 %1185, %v69_v21  }
  0x4b   :  { %227 = vperm.xlu0 %1189, %v73_v22  }
  0x4d   :  { %1187 = vset.pattern.permute.xlu1 %v1264_v0 }
  0x4e   :  { %211 = vperm.xlu1 %1187, %v69_v21  }
  0x52   :  { %215 = vperm.xlu1 %1187, %v70_v17  }
  0x56   :  { %1188 = vset.pattern.permute.xlu1 %v1265_v1 }
  0x57   :  { %133 = vperm.xlu1 %1188, %v72_v23  }
  0x5b   :  { %1190 = vset.pattern.permute.xlu1 %v1264_v0 }
  0x5c   :  { %223 = vperm.xlu1 %1190, %v72_v23  }
  0x60   :  { %1191 = vset.pattern.permute.xlu1 %v1265_v1 }
  0x61   :  { %138 = vperm.xlu1 %1191, %v73_v22  }
  0x99   :  { %v180_v25 = vpop.permute.xlu1 %179  ;;  %v79_v27 = vpop.permute.xlu0 %78 }
  0x9a   :  { %v145_v28 = vmul.f32 %v1430_v24, %v79_v27  ;;  %v234_v33 = vmul.f32 %v1441_v29, %v180_v25 }
  0x9c   :  { %v164_v30 = vadd.f32 %v1435_v26, %v145_v28 }
  0x9d   :  { %v184_v31 = vpop.permute.xlu1 %183  ;;  %v84_v32 = vpop.permute.xlu0 %83 }
  0x9e   :  { %v146_v34 = vmul.f32 %v1430_v24, %v84_v32  ;;  %v247_v35 = vadd.f32 %v234_v33, %v164_v30  ;;  %v235_v36 = vmul.f32 %v1441_v29, %v184_v31 }
  0xa0   :  { %v165_v37 = vadd.f32 %v1435_v26, %v146_v34  ;;  %v260_v41 = vmax.f32 %v247_v35, 0.0 }
  0xa2   :  { %v248_v38 = vadd.f32 %v235_v36, %v165_v37  ;;  %v94_v39 = vpop.permute.xlu1 %93  ;;  %v188_v40 = vpop.permute.xlu0 %187 }
  0xa3   :  { %v148_v43 = vmul.f32 %v1430_v24, %v94_v39  ;;  %v236_v48 = vmul.f32 %v1441_v29, %v188_v40 }
  0xa4   :  { %v261_v42 = vmax.f32 %v248_v38, 0.0 }
  0xa5   :  { %v167_v47 = vadd.f32 %v1435_v26, %v148_v43 }
  0xa6   :  { %v273_v44 = vpack.c.bf16 %v261_v42, %v260_v41 }
  0xa7   :  { %v192_v45 = vpop.permute.xlu1 %191  ;;  %v89_v46 = vpop.permute.xlu0 %88 }
  0xa8   :  { %v237_v49 = vmul.f32 %v1441_v29, %v192_v45  ;;  %v147_v50 = vmul.f32 %v1430_v24, %v89_v46  ;;  %1035 = vmatmul.mubr.bf16.vlgmr.msra.gmra.mxu0 %v273_v44  ;;  %v1200_v45 = vld [vmem:[#allocation2 + $0x38] sm:$0xff]  }
  0xa9   :  { %1038 = vmatprep.mubr.msk.bf16.mxu0 %vm1267_vm0, %v1266_v2 }
  0xaa   :  { %v250_v51 = vadd.f32 %v237_v49, %v167_v47  ;;  %v166_v52 = vadd.f32 %v1435_v26, %v147_v50 }
  0xab   :  { %v104_v55 = vpop.permute.xlu0 %103 }
  0xac   :  { %v249_v53 = vadd.f32 %v236_v48, %v166_v52  ;;  %v99_v54 = vpop.permute.xlu1 %98  ;;  %v263_v56 = vmax.f32 %v250_v51, 0.0  ;;  %v150_v59 = vmul.f32 %v1430_v24, %v104_v55  ;;  %v1201_v51 = vld [vmem:[#allocation2 + $0x30] sm:$0xff]  }
  0xad   :  { %v149_v58 = vmul.f32 %v1430_v24, %v99_v54 }
  0xae   :  { %v262_v57 = vmax.f32 %v249_v53, 0.0  ;;  %v169_v1 = vadd.f32 %v1435_v26, %v150_v59 }
  0xaf   :  { %v109_v63 = vpop.permute.xlu0 %108  ;;  %v168_v0 = vadd.f32 %v1435_v26, %v149_v58 }
  0xb0   :  { %v274_v60 = vpack.c.bf16 %v263_v56, %v262_v57  ;;  %v151_v6 = vmul.f32 %v1430_v24, %v109_v63  ;;  %v1202_v56 = vld [vmem:[#allocation2 + $0x28] sm:$0xff]  }
  0xb1   :  { %v196_v61 = vpop.permute.xlu1 %195 }
  0xb2   :  { %v238_v62 = vmul.f32 %v1441_v29, %v196_v61  ;;  %1039 = vmatmul.mubr.bf16.gmra.mxu0 %v274_v60  ;;  %v170_v12 = vadd.f32 %v1435_v26, %v151_v6  ;;  %v1205_v6 = vld [vmem:[#allocation2 + $0x10] sm:$0xff]  }
  0xb3   :  { %1042 = vmatprep.mubr.msk.bf16.mxu0 %vm1267_vm0, %v1266_v2 }
  0xb4   :  { %v251_v4 = vadd.f32 %v238_v62, %v168_v0  ;;  %v204_v8 = vpop.permute.xlu0 %203 }
  0xb5   :  { %v200_v3 = vpop.permute.xlu1 %199  ;;  %v240_v13 = vmul.f32 %v1441_v29, %v204_v8  ;;  %v1209_v8 = vld [vmem:[#allocation4 + $0x30] sm:$0xff]  }
  0xb6   :  { %v239_v5 = vmul.f32 %v1441_v29, %v200_v3  ;;  %v264_v9 = vmax.f32 %v251_v4, 0.0 }
  0xb7   :  { %v253_v17 = vadd.f32 %v240_v13, %v170_v12  ;;  %v1510_v12 = vld [vmem:[%s1597_s4] ss:$0 sm:$0xff] }
  0xb8   :  { %v252_v7 = vadd.f32 %v239_v5, %v169_v1  ;;  %v1203_v1 = vld [vmem:[#allocation2 + $0x20] sm:$0xff]   ;;  %v1204_v5 = vld [vmem:[#allocation2 + $0x18] sm:$0xff]  }
  0xb9   :  { %v266_v21 = vmax.f32 %v253_v17, 0.0  ;;  %v124_v25 = vpop.permute.xlu0 %123 }
  0xba   :  { %v265_v10 = vmax.f32 %v252_v7, 0.0  ;;  %v114_v11 = vpop.permute.xlu1 %113  ;;  %v154_v30 = vmul.f32 %v1430_v24, %v124_v25  ;;  %v1208_v7 = vld [vmem:[#allocation4 + $0x38] sm:$0xff]  }
  0xbb   :  { %v152_v14 = vmul.f32 %v1430_v24, %v114_v11  ;;  %1107 = vmatpush3.bf16.msra.mxu0 %v1208_v7  ;;  %v1212_v11 = vld [vmem:[#allocation4 + $0x18] sm:$0xff]  }
  0xbc   :  { %v275_v15 = vpack.c.bf16 %v265_v10, %v264_v9  ;;  %v173_v35 = vadd.f32 %v1435_v26, %v154_v30  ;;  %1108 = vmatprep.subr.bf16.mxu0 %v1266_v2  ;;  %v1210_v9 = vld [vmem:[#allocation4 + $0x28] sm:$0xff]   ;;  %v1211_v10 = vld [vmem:[#allocation4 + $0x20] sm:$0xff]  }
  0xbd   :  { %v171_v18 = vadd.f32 %v1435_v26, %v152_v14  ;;  %v129_v33 = vpop.permute.xlu0 %128 }
  0xbe   :  { %1043 = vmatmul.mubr.bf16.gmra.mxu0 %v275_v15  ;;  %v155_v39 = vmul.f32 %v1430_v24, %v129_v33 }
  0xbf   :  { %v208_v16 = vpop.permute.xlu1 %207  ;;  %1046 = vmatprep.mubr.msk.bf16.mxu0 %vm1267_vm0, %v1266_v2  ;;  %1109 = vmatpush3.bf16.msra.mxu0 %v1209_v8 }
  0xc0   :  { %v241_v19 = vmul.f32 %v1441_v29, %v208_v16  ;;  %v174_v46 = vadd.f32 %v1435_v26, %v155_v39  ;;  %1110 = vmatprep.subr.bf16.mxu0 %v1266_v2 }
  0xc2   :  { %v254_v20 = vadd.f32 %v241_v19, %v171_v18  ;;  %v220_v41 = vpop.permute.xlu0 %219 }
  0xc3   :  { %v244_v47 = vmul.f32 %v1441_v29, %v220_v41  ;;  %1111 = vmatpush3.bf16.msra.mxu0 %v1210_v9 }
  0xc4   :  { %v267_v22 = vmax.f32 %v254_v20, 0.0  ;;  %v119_v23 = vpop.permute.xlu1 %118  ;;  %1112 = vmatprep.subr.bf16.mxu0 %v1266_v2 }
  0xc5   :  { %v153_v28 = vmul.f32 %v1430_v24, %v119_v23  ;;  %v257_v52 = vadd.f32 %v244_v47, %v174_v46 }
  0xc6   :  { %v276_v27 = vpack.c.bf16 %v267_v22, %v266_v21  ;;  %v228_v59 = vpop.permute.xlu0 %227 }
  0xc7   :  { %v172_v34 = vadd.f32 %v1435_v26, %v153_v28  ;;  %v270_v57 = vmax.f32 %v257_v52, 0.0  ;;  %v246_v63 = vmul.f32 %v1441_v29, %v228_v59  ;;  %1113 = vmatpush3.bf16.msra.mxu0 %v1211_v10 }
  0xc8   :  { %1047 = vmatmul.mubr.bf16.gmra.mxu0 %v276_v27  ;;  %1114 = vmatprep.subr.bf16.mxu0 %v1266_v2 }
  0xc9   :  { %v212_v31 = vpop.permute.xlu1 %211  ;;  %1122 = vmatprep.mubr.msk.bf16.mxu0 %vm1267_vm0, %v1266_v2 }
  0xca   :  { %v242_v32 = vmul.f32 %v1441_v29, %v212_v31 }
  0xcb   :  { %1115 = vmatpush3.bf16.msra.mxu0 %v1212_v11  ;;  %v1213_v11 = vld [vmem:[#allocation4 + $0x10] sm:$0xff]  }
  0xcc   :  { %v255_v37 = vadd.f32 %v242_v32, %v172_v34  ;;  %1116 = vmatprep.subr.bf16.mxu0 %v1266_v2 }
  0xcd   :  { %v216_v36 = vpop.permute.xlu1 %215 }
  0xce   :  { %v243_v38 = vmul.f32 %v1441_v29, %v216_v36  ;;  %v268_v42 = vmax.f32 %v255_v37, 0.0 }
  0xcf   :  { %1117 = vmatpush3.bf16.msra.mxu0 %v1213_v11 }
  0xd0   :  { %v256_v40 = vadd.f32 %v243_v38, %v173_v35  ;;  %1118 = vmatprep.subr.bf16.mxu0 %v1266_v2 }
  0xd2   :  { %v269_v43 = vmax.f32 %v256_v40, 0.0  ;;  %v134_v44 = vpop.permute.xlu1 %133 }
  0xd3   :  { %v156_v48 = vmul.f32 %v1430_v24, %v134_v44 }
  0xd4   :  { %v277_v49 = vpack.c.bf16 %v269_v43, %v268_v42 }
  0xd5   :  { %v175_v53 = vadd.f32 %v1435_v26, %v156_v48 }
  0xd6   :  { %1051 = vmatmul.mubr.bf16.vlgmr.msra.gmra.mxu1 %v277_v49 }
  0xd7   :  { %v224_v50 = vpop.permute.xlu1 %223  ;;  %1054 = vmatprep.mubr.msk.bf16.mxu1 %vm1267_vm0, %v1266_v2  ;;  %1063 = vmatpush3.bf16.msra.mxu1 %v1200_v45 }
  0xd8   :  { %v245_v54 = vmul.f32 %v1441_v29, %v224_v50  ;;  %1064 = vmatprep.subr.bf16.mxu1 %v1266_v2  ;;  %v1207_v29 = vld [vmem:[#allocation2] sm:$0xff]  }
  0xda   :  { %v258_v55 = vadd.f32 %v245_v54, %v175_v53 }
  0xdb   :  { %1065 = vmatpush3.bf16.msra.mxu1 %v1201_v51 }
  0xdc   :  { %v271_v58 = vmax.f32 %v258_v55, 0.0  ;;  %v139_v60 = vpop.permute.xlu1 %138  ;;  %1066 = vmatprep.subr.bf16.mxu1 %v1266_v2 }
  0xdd   :  { %v157_v61 = vmul.f32 %v1430_v24, %v139_v60 }
  0xde   :  { %v278_v62 = vpack.c.bf16 %v271_v58, %v270_v57 }
  0xdf   :  { %v176_v0 = vadd.f32 %v1435_v26, %v157_v61  ;;  %1067 = vmatpush3.bf16.msra.mxu1 %v1202_v56  ;;  %v1206_v26 = vld [vmem:[#allocation2 + $0x8] sm:$0xff]  }
  0xe0   :  { %1055 = vmatmul.mubr.bf16.gmra.mxu1 %v278_v62  ;;  %1068 = vmatprep.subr.bf16.mxu1 %v1266_v2 }
  0xe1   :  { %v259_v3 = vadd.f32 %v246_v63, %v176_v0  ;;  %1058 = vmatprep.mubr.msk.bf16.mxu1 %vm1267_vm0, %v1266_v2 }
  0xe3   :  { %v272_v4 = vmax.f32 %v259_v3, 0.0  ;;  %1069 = vmatpush3.bf16.msra.mxu1 %v1203_v1 }
  0xe4   :  { %1070 = vmatprep.subr.bf16.mxu1 %v1266_v2 }
  0xe5   :  { %v279_v24 = vpack.c.bf16 %v272_v4, %v272_v4 }
  0xe7   :  { %1071 = vmatpush3.bf16.msra.mxu1 %v1204_v5 }
  0xe8   :  { %1059 = vmatmul.mubr.bf16.gmra.mxu1 %v279_v24  ;;  %1072 = vmatprep.subr.bf16.mxu1 %v1266_v2 }
  0xe9   :  { %1078 = vmatprep.mubr.msk.bf16.mxu1 %vm1267_vm0, %v1266_v2 }
  0xeb   :  { %1073 = vmatpush3.bf16.msra.mxu1 %v1205_v6 }
  0xec   :  { %1074 = vmatprep.subr.bf16.mxu1 %v1266_v2 }
  0xef   :  { %1075 = vmatpush3.bf16.msra.mxu1 %v1206_v26 }
  0xf0   :  { %1076 = vmatprep.subr.bf16.mxu1 %v1266_v2 }
  0xf3   :  { %1077 = vmatpush3.bf16.msra.mxu1 %v1207_v29 }
 0x168   :  { %v385_v13 = vpop.f32.mrf.mxu0 }
 0x169   :  { %v386_v15 = vadd.f32 %v1510_v12, %v385_v13  ;;  %v1214_v13 = vld [vmem:[#allocation4 + $0x8] sm:$0xff]  }
 0x16a   :  { %v1036_v14 = vpop.f32.mrf.mxu0  ;;  %1119 = vmatpush3.bf16.msra.mxu0 %v1214_v13 }
 0x16b   :  { %v439_v19 = vmax.f32 %v386_v15, 0.0  ;;  %1120 = vmatprep.subr.bf16.mxu0 %v1266_v2  ;;  %v1215_v14 = vld [vmem:[#allocation4] sm:$0xff]  }
 0x16c   :  { %v388_v16 = vpop.f32.mrf.mxu0 }
 0x16d   :  { %v389_v17 = vadd.f32 %v1510_v12, %v388_v16 }
 0x16e   :  { %v1037_v18 = vpop.f32.mrf.mxu0  ;;  %1121 = vmatpush3.bf16.msra.mxu0 %v1215_v14  ;;  %v903_v14 = vld [vmem:[%s1601_s8] ss:$0 sm:$0xff] }
 0x16f   :  { %v440_v20 = vmax.f32 %v389_v17, 0.0 }
 0x171   :  { %v452_v21 = vpack.c.bf16 %v440_v20, %v439_v19 }
 0x172   :  { %v393_v22 = vpop.f32.mrf.mxu0 }
 0x173   :  { %1079 = vmatmul.mubr.bf16.vlgmr.msra.gmra.mxu1 %v452_v21  ;;  %v394_v25 = vadd.f32 %v1510_v12, %v393_v22 }
 0x174   :  { %v1040_v23 = vpop.f32.mrf.mxu0  ;;  %1082 = vmatprep.mubr.msk.bf16.mxu1 %vm1267_vm0, %v1266_v2 }
 0x175   :  { %v441_v31 = vmax.f32 %v394_v25, 0.0 }
 0x176   :  { %v396_v27 = vpop.f32.mrf.mxu0 }
 0x177   :  { %v397_v28 = vadd.f32 %v1510_v12, %v396_v27 }
 0x178   :  { %v1041_v30 = vpop.f32.mrf.mxu0 }
 0x179   :  { %v442_v32 = vmax.f32 %v397_v28, 0.0 }
 0x17b   :  { %v453_v33 = vpack.c.bf16 %v442_v32, %v441_v31 }
 0x17d   :  { %1083 = vmatmul.mubr.bf16.gmra.mxu1 %v453_v33 }
 0x17e   :  { %v401_v34 = vpop.f32.mrf.mxu0  ;;  %1086 = vmatprep.mubr.msk.bf16.mxu1 %vm1267_vm0, %v1266_v2 }
 0x17f   :  { %v402_v36 = vadd.f32 %v1510_v12, %v401_v34 }
 0x180   :  { %v1044_v35 = vpop.f32.mrf.mxu0 }
 0x181   :  { %v443_v40 = vmax.f32 %v402_v36, 0.0 }
 0x182   :  { %v404_v37 = vpop.f32.mrf.mxu0 }
 0x183   :  { %v405_v38 = vadd.f32 %v1510_v12, %v404_v37 }
 0x184   :  { %v1045_v39 = vpop.f32.mrf.mxu0 }
 0x185   :  { %v444_v41 = vmax.f32 %v405_v38, 0.0 }
 0x187   :  { %v454_v42 = vpack.c.bf16 %v444_v41, %v443_v40 }
 0x188   :  { %v409_v43 = vpop.f32.mrf.mxu0 }
 0x189   :  { %1087 = vmatmul.mubr.bf16.gmra.mxu1 %v454_v42  ;;  %v410_v45 = vadd.f32 %v1510_v12, %v409_v43 }
 0x18a   :  { %v1048_v44 = vpop.f32.mrf.mxu0  ;;  %1090 = vmatprep.mubr.msk.bf16.mxu1 %vm1267_vm0, %v1266_v2 }
 0x18b   :  { %v445_v49 = vmax.f32 %v410_v45, 0.0 }
 0x18c   :  { %v412_v46 = vpop.f32.mrf.mxu0 }
 0x18d   :  { %v413_v47 = vadd.f32 %v1510_v12, %v412_v46 }
 0x18e   :  { %v1049_v48 = vpop.f32.mrf.mxu0 }
 0x18f   :  { %v446_v50 = vmax.f32 %v413_v47, 0.0 }
 0x191   :  { %v455_v51 = vpack.c.bf16 %v446_v50, %v445_v49 }
 0x193   :  { %1091 = vmatmul.mubr.bf16.gmra.mxu1 %v455_v51 }
 0x194   :  { %1094 = vmatprep.mubr.msk.bf16.mxu1 %vm1267_vm0, %v1266_v2 }
 0x196   :  { %v417_v52 = vpop.f32.mrf.mxu1 }
 0x197   :  { %v418_v54 = vadd.f32 %v1510_v12, %v417_v52 }
 0x198   :  { %v1052_v53 = vpop.f32.mrf.mxu1 }
 0x199   :  { %v447_v58 = vmax.f32 %v418_v54, 0.0 }
 0x19a   :  { %v420_v55 = vpop.f32.mrf.mxu1 }
 0x19b   :  { %v421_v56 = vadd.f32 %v1510_v12, %v420_v55 }
 0x19c   :  { %v1053_v57 = vpop.f32.mrf.mxu1 }
 0x19d   :  { %v448_v59 = vmax.f32 %v421_v56, 0.0 }
 0x19f   :  { %v456_v60 = vpack.c.bf16 %v448_v59, %v447_v58 }
 0x1a0   :  { %v425_v61 = vpop.f32.mrf.mxu1 }
 0x1a1   :  { %1095 = vmatmul.mubr.bf16.gmra.mxu1 %v456_v60  ;;  %v426_v63 = vadd.f32 %v1510_v12, %v425_v61 }
 0x1a2   :  { %v1056_v62 = vpop.f32.mrf.mxu1  ;;  %1098 = vmatprep.mubr.msk.bf16.mxu1 %vm1267_vm0, %v1266_v2 }
 0x1a3   :  { %v449_v4 = vmax.f32 %v426_v63, 0.0 }
 0x1a4   :  { %v428_v0 = vpop.f32.mrf.mxu1 }
 0x1a5   :  { %v429_v1 = vadd.f32 %v1510_v12, %v428_v0 }
 0x1a6   :  { %v1057_v3 = vpop.f32.mrf.mxu1 }
 0x1a7   :  { %v450_v5 = vmax.f32 %v429_v1, 0.0 }
 0x1a8   :  { %v433_v24 = vpop.f32.mrf.mxu1 }
 0x1a9   :  { %v457_v6 = vpack.c.bf16 %v450_v5, %v449_v4  ;;  %v434_v26 = vadd.f32 %v1510_v12, %v433_v24  ;;  %v1542_v12 = vld [vmem:[%s1599_s6] ss:$0 sm:$0xff] }
 0x1aa   :  { %v1060_v29 = vpop.f32.mrf.mxu1 }
 0x1ab   :  { %1099 = vmatmul.mubr.bf16.gmra.mxu1 %v457_v6  ;;  %v451_v8 = vmax.f32 %v434_v26, 0.0 }
 0x1ac   :  { %v436_v7 = vpop.f32.mrf.mxu1  ;;  %1102 = vmatprep.mubr.msk.bf16.mxu1 %vm1267_vm0, %v1266_v2 }
 0x1ad   :  { %v458_v10 = vpack.c.bf16 %v451_v8, %v451_v8 }
 0x1ae   :  { %v1061_v9 = vpop.f32.mrf.mxu1 }
 0x1b3   :  { %1103 = vmatmul.mubr.bf16.gmra.mxu1 %v458_v10 }
 0x233   :  { %v564_v15 = vpop.f32.mrf.mxu1 }
 0x234   :  { %v565_v17 = vadd.f32 %v1542_v12, %v564_v15 }
 0x235   :  { %v1080_v16 = vpop.f32.mrf.mxu1 }
 0x236   :  { %v618_v21 = vmax.f32 %v565_v17, 0.0 }
 0x237   :  { %v567_v18 = vpop.f32.mrf.mxu1 }
 0x238   :  { %v568_v19 = vadd.f32 %v1542_v12, %v567_v18 }
 0x239   :  { %v1081_v20 = vpop.f32.mrf.mxu1 }
 0x23a   :  { %v619_v22 = vmax.f32 %v568_v19, 0.0 }
 0x23c   :  { %v631_v23 = vpack.c.bf16 %v619_v22, %v618_v21 }
 0x23d   :  { %v572_v25 = vpop.f32.mrf.mxu1 }
 0x23e   :  { %1123 = vmatmul.mubr.bf16.vlgmr.msra.gmra.mxu0 %v631_v23  ;;  %v573_v28 = vadd.f32 %v1542_v12, %v572_v25 }
 0x23f   :  { %v1084_v27 = vpop.f32.mrf.mxu1  ;;  %1126 = vmatprep.mubr.msk.bf16.mxu0 %vm1267_vm0, %v1266_v2 }
 0x240   :  { %v620_v33 = vmax.f32 %v573_v28, 0.0 }
 0x241   :  { %v575_v30 = vpop.f32.mrf.mxu1 }
 0x242   :  { %v576_v31 = vadd.f32 %v1542_v12, %v575_v30 }
 0x243   :  { %v1085_v32 = vpop.f32.mrf.mxu1 }
 0x244   :  { %v621_v34 = vmax.f32 %v576_v31, 0.0 }
 0x246   :  { %v632_v35 = vpack.c.bf16 %v621_v34, %v620_v33 }
 0x248   :  { %1127 = vmatmul.mubr.bf16.gmra.mxu0 %v632_v35 }
 0x249   :  { %v580_v36 = vpop.f32.mrf.mxu1  ;;  %1130 = vmatprep.mubr.msk.bf16.mxu0 %vm1267_vm0, %v1266_v2 }
 0x24a   :  { %v581_v38 = vadd.f32 %v1542_v12, %v580_v36 }
 0x24b   :  { %v1088_v37 = vpop.f32.mrf.mxu1 }
 0x24c   :  { %v622_v42 = vmax.f32 %v581_v38, 0.0 }
 0x24d   :  { %v583_v39 = vpop.f32.mrf.mxu1 }
 0x24e   :  { %v584_v40 = vadd.f32 %v1542_v12, %v583_v39 }
 0x24f   :  { %v1089_v41 = vpop.f32.mrf.mxu1 }
 0x250   :  { %v623_v43 = vmax.f32 %v584_v40, 0.0 }
 0x252   :  { %v633_v44 = vpack.c.bf16 %v623_v43, %v622_v42 }
 0x253   :  { %v588_v45 = vpop.f32.mrf.mxu1 }
 0x254   :  { %1131 = vmatmul.mubr.bf16.gmra.mxu0 %v633_v44  ;;  %v589_v47 = vadd.f32 %v1542_v12, %v588_v45 }
 0x255   :  { %v1092_v46 = vpop.f32.mrf.mxu1  ;;  %1134 = vmatprep.mubr.msk.bf16.mxu0 %vm1267_vm0, %v1266_v2 }
 0x256   :  { %v624_v51 = vmax.f32 %v589_v47, 0.0 }
 0x257   :  { %v591_v48 = vpop.f32.mrf.mxu1 }
 0x258   :  { %v592_v49 = vadd.f32 %v1542_v12, %v591_v48 }
 0x259   :  { %v1093_v50 = vpop.f32.mrf.mxu1 }
 0x25a   :  { %v625_v52 = vmax.f32 %v592_v49, 0.0 }
 0x25c   :  { %v634_v53 = vpack.c.bf16 %v625_v52, %v624_v51 }
 0x25e   :  { %1135 = vmatmul.mubr.bf16.gmra.mxu0 %v634_v53 }
 0x25f   :  { %1138 = vmatprep.mubr.msk.bf16.mxu0 %vm1267_vm0, %v1266_v2 }
 0x261   :  { %v596_v54 = vpop.f32.mrf.mxu1 }
 0x262   :  { %v597_v56 = vadd.f32 %v1542_v12, %v596_v54 }
 0x263   :  { %v1096_v55 = vpop.f32.mrf.mxu1 }
 0x264   :  { %v626_v60 = vmax.f32 %v597_v56, 0.0 }
 0x265   :  { %v599_v57 = vpop.f32.mrf.mxu1 }
 0x266   :  { %v600_v58 = vadd.f32 %v1542_v12, %v599_v57 }
 0x267   :  { %v1097_v59 = vpop.f32.mrf.mxu1 }
 0x268   :  { %v627_v61 = vmax.f32 %v600_v58, 0.0 }
 0x26a   :  { %v635_v62 = vpack.c.bf16 %v627_v61, %v626_v60 }
 0x26b   :  { %v604_v63 = vpop.f32.mrf.mxu1 }
 0x26c   :  { %1139 = vmatmul.mubr.bf16.gmra.mxu0 %v635_v62  ;;  %v605_v1 = vadd.f32 %v1542_v12, %v604_v63 }
 0x26d   :  { %v1100_v0 = vpop.f32.mrf.mxu1  ;;  %1142 = vmatprep.mubr.msk.bf16.mxu0 %vm1267_vm0, %v1266_v2 }
 0x26e   :  { %v628_v24 = vmax.f32 %v605_v1, 0.0 }
 0x26f   :  { %v607_v3 = vpop.f32.mrf.mxu1 }
 0x270   :  { %v608_v4 = vadd.f32 %v1542_v12, %v607_v3 }
 0x271   :  { %v1101_v5 = vpop.f32.mrf.mxu1 }
 0x272   :  { %v629_v6 = vmax.f32 %v608_v4, 0.0 }
 0x273   :  { %v612_v26 = vpop.f32.mrf.mxu1 }
 0x274   :  { %v636_v29 = vpack.c.bf16 %v629_v6, %v628_v24  ;;  %v613_v7 = vadd.f32 %v1542_v12, %v612_v26 }
 0x275   :  { %v1104_v8 = vpop.f32.mrf.mxu1 }
 0x276   :  { %1143 = vmatmul.mubr.bf16.gmra.mxu0 %v636_v29  ;;  %v630_v10 = vmax.f32 %v613_v7, 0.0 }
 0x277   :  { %v615_v9 = vpop.f32.mrf.mxu1  ;;  %1146 = vmatprep.mubr.msk.bf16.mxu0 %vm1267_vm0, %v1266_v2 }
 0x278   :  { %v637_v13 = vpack.c.bf16 %v630_v10, %v630_v10 }
 0x279   :  { %v1105_v11 = vpop.f32.mrf.mxu1 }
 0x27e   :  { %1147 = vmatmul.mubr.bf16.gmra.mxu0 %v637_v13 }
 0x2fe   :  { %v743_v15 = vpop.f32.mrf.mxu0 }
 0x2ff   :  { %v744_v17 = vadd.f32 %v903_v14, %v743_v15 }
 0x300   :  { %v1124_v16 = vpop.f32.mrf.mxu0 }
 0x301   :  { %v797_v20 = vmax.f32 %v744_v17, 0.0 }
 0x302   :  { %v746_v18 = vpop.f32.mrf.mxu0 }
 0x303   :  { %v747_v19 = vadd.f32 %v903_v14, %v746_v18 }
 0x304   :  { %v1125_v12 = vpop.f32.mrf.mxu0 }
 0x305   :  { %v798_v21 = vmax.f32 %v747_v19, 0.0 }
 0x307   :  { %v941_v22 = vpack.c.bf16 %v798_v21, %v797_v20 }
 0x308   :  { %v751_v23 = vpop.f32.mrf.mxu0 }
 0x309   :  { %942 = vst [vmem:[%s1602_s9] sm:$0xff] %v941_v22   ;;  %v752_v25 = vadd.f32 %v903_v14, %v751_v23 }
 0x30a   :  { %v1128_v2 = vpop.f32.mrf.mxu0 }
 0x30b   :  { %v799_v31 = vmax.f32 %v752_v25, 0.0 }
 0x30c   :  { %v754_v27 = vpop.f32.mrf.mxu0 }
 0x30d   :  { %v755_v28 = vadd.f32 %v903_v14, %v754_v27 }
 0x30e   :  { %v1129_v30 = vpop.f32.mrf.mxu0 }
 0x30f   :  { %v800_v32 = vmax.f32 %v755_v28, 0.0 }
 0x311   :  { %v946_v33 = vpack.c.bf16 %v800_v32, %v799_v31 }
 0x313   :  { %968 = vst [vmem:[%s1602_s9 + $0x8] sm:$0xff] %v946_v33  }
 0x314   :  { %v759_v34 = vpop.f32.mrf.mxu0 }
 0x315   :  { %v760_v36 = vadd.f32 %v903_v14, %v759_v34 }
 0x316   :  { %v1132_v35 = vpop.f32.mrf.mxu0 }
 0x317   :  { %v801_v40 = vmax.f32 %v760_v36, 0.0 }
 0x318   :  { %v762_v37 = vpop.f32.mrf.mxu0 }
 0x319   :  { %v763_v38 = vadd.f32 %v903_v14, %v762_v37 }
 0x31a   :  { %v1133_v39 = vpop.f32.mrf.mxu0 }
 0x31b   :  { %v802_v41 = vmax.f32 %v763_v38, 0.0 }
 0x31d   :  { %v951_v42 = vpack.c.bf16 %v802_v41, %v801_v40 }
 0x31e   :  { %v767_v43 = vpop.f32.mrf.mxu0 }
 0x31f   :  { %969 = vst [vmem:[%s1602_s9 + $0x10] sm:$0xff] %v951_v42   ;;  %v768_v45 = vadd.f32 %v903_v14, %v767_v43 }
 0x320   :  { %v1136_v44 = vpop.f32.mrf.mxu0 }
 0x321   :  { %v803_v49 = vmax.f32 %v768_v45, 0.0 }
 0x322   :  { %v770_v46 = vpop.f32.mrf.mxu0 }
 0x323   :  { %v771_v47 = vadd.f32 %v903_v14, %v770_v46 }
 0x324   :  { %v1137_v48 = vpop.f32.mrf.mxu0 }
 0x325   :  { %v804_v50 = vmax.f32 %v771_v47, 0.0 }
 0x327   :  { %v956_v51 = vpack.c.bf16 %v804_v50, %v803_v49 }
 0x329   :  { %970 = vst [vmem:[%s1602_s9 + $0x18] sm:$0xff] %v956_v51  }
 0x32c   :  { %v775_v52 = vpop.f32.mrf.mxu0 }
 0x32d   :  { %v776_v54 = vadd.f32 %v903_v14, %v775_v52 }
 0x32e   :  { %v1140_v53 = vpop.f32.mrf.mxu0 }
 0x32f   :  { %v805_v58 = vmax.f32 %v776_v54, 0.0 }
 0x330   :  { %v778_v55 = vpop.f32.mrf.mxu0 }
 0x331   :  { %v779_v56 = vadd.f32 %v903_v14, %v778_v55 }
 0x332   :  { %v1141_v57 = vpop.f32.mrf.mxu0 }
 0x333   :  { %v806_v59 = vmax.f32 %v779_v56, 0.0 }
 0x335   :  { %v961_v60 = vpack.c.bf16 %v806_v59, %v805_v58 }
 0x336   :  { %v783_v61 = vpop.f32.mrf.mxu0 }
 0x337   :  { %971 = vst [vmem:[%s1602_s9 + $0x20] sm:$0xff] %v961_v60   ;;  %v784_v63 = vadd.f32 %v903_v14, %v783_v61 }
 0x338   :  { %v1144_v62 = vpop.f32.mrf.mxu0 }
 0x339   :  { %v807_v4 = vmax.f32 %v784_v63, 0.0 }
 0x33a   :  { %v786_v0 = vpop.f32.mrf.mxu0 }
 0x33b   :  { %v787_v1 = vadd.f32 %v903_v14, %v786_v0 }
 0x33c   :  { %v1145_v3 = vpop.f32.mrf.mxu0 }
 0x33d   :  { %v808_v5 = vmax.f32 %v787_v1, 0.0 }
 0x33e   :  { %v791_v24 = vpop.f32.mrf.mxu0 }
 0x33f   :  { %v966_v6 = vpack.c.bf16 %v808_v5, %v807_v4  ;;  %v792_v26 = vadd.f32 %v903_v14, %v791_v24 }
 0x340   :  { %v1148_v29 = vpop.f32.mrf.mxu0 }
 0x341   :  { %972 = vst [vmem:[%s1602_s9 + $0x28] sm:$0xff] %v966_v6   ;;  %v809_v7 = vmax.f32 %v792_v26, 0.0 }
 0x342   :  { %v794_v8 = vpop.f32.mrf.mxu0 }
 0x343   :  { %v937_v9 = vpack.c.bf16 %v809_v7, %v809_v7 }
 0x344   :  { %v1149_v10 = vpop.f32.mrf.mxu0 }
 0x345   :  { %875 = vst [vmem:[%s1602_s9 + $0x30] sm:$0x3] %v937_v9 }
 0x346   :  { %880 = vsyncpa [#allocation3], 1 }
 0x347   :  { %881 = vsyncpa [#allocation5], 1 }

</bundles_post_ra>
